<compile_context>
chip_gen: v6e
topology: v6e:2x2x1
jax: 0.10.0
libtpu: 0.0.40
codegen_flags: <defaults>
</compile_context>

<pallas_src>
import jax
import jax.numpy as jnp
from jax.experimental import pallas as pl
from jax.experimental.pallas import tpu as pltpu


def _predictor_kernel(dst_f, dst_lang, s_f, src_lang, src_f,
                      w1a, w1b, w1c, w1d, w1e, b1, w2_rows, b2, out_ref):
    f32 = jnp.float32
    # Layer 1: split-W1 partial matmuls (replaces torch.cat + single matmul),
    # bf16 operands, f32 accumulation on the MXU.
    h = jnp.dot(dst_f[...], w1a[...], preferred_element_type=f32)
    h = h + jnp.dot(dst_lang[...], w1b[...], preferred_element_type=f32)
    h = h + jnp.dot(s_f[...], w1c[...], preferred_element_type=f32)
    h = h + jnp.dot(src_lang[...], w1d[...], preferred_element_type=f32)
    h = h + jnp.dot(src_f[...], w1e[...], preferred_element_type=f32)
    h = jnp.maximum(h + b1[...], 0.0)                      # bias + ReLU, f32

    # Layer 2 (d_out == 1): produce the result directly in lane-dense
    # (rows, tile_e) orientation; w2_rows is (8, hidden) with the real weight
    # vector in row 0 (rows 1..7 zero-padded for sublane alignment).
    pred = jax.lax.dot_general(
        w2_rows[...], h,
        dimension_numbers=(((1,), (1,)), ((), ())),        # contract hidden
        preferred_element_type=f32)                        # (8, tile_e)
    out_ref[...] = pred[0:1, :] + b2[...]                  # (1, tile_e) row


def predictor_forward(dst_f, dst_lang, s_f, src_lang, src_f, w1, b1, w2, b2,
                      *, tile_e=1024):
    """pred = MLP(cat([dst_f, dst_lang, s_f, src_lang, src_f], dim=1))."""
    E = dst_f.shape[0]
    c_sizes = [dst_f.shape[1], dst_lang.shape[1], s_f.shape[1],
               src_lang.shape[1], src_f.shape[1]]
    d_in, hidden = w1.shape
    d_out = w2.shape[1]
    assert d_in == sum(c_sizes)
    # Lane-dense readout path is specialized to the scalar edge-logit case.
    assert d_out == 1, "lane-dense readout assumes a single output logit"
    assert tile_e % 128 == 0

    # Keep >= 2 grid steps when possible so v7x's second TensorCore has work.
    while tile_e > 128 and pl.cdiv(E, tile_e) < 2:
        tile_e //= 2
    n_tiles = pl.cdiv(E, tile_e)
    e_pad = n_tiles * tile_e
    pad = e_pad - E

    # bf16 MXU operands (elementwise stays f32); pad ragged edge count.
    def prep(x):
        x = x.astype(jnp.bfloat16)
        return jnp.pad(x, ((0, pad), (0, 0))) if pad else x

    feats = [prep(x) for x in (dst_f, dst_lang, s_f, src_lang, src_f)]

    # Split W1 into one row block per concatenated feature source.
    w1_bf = w1.astype(jnp.bfloat16)
    offs, w1_blocks = 0, []
    for c in c_sizes:
        w1_blocks.append(w1_bf[offs:offs + c, :])
        offs += c

    b1_2d = b1.reshape(1, hidden).astype(jnp.float32)
    # w2 as a lane-dense row, zero-padded to 8 sublanes.
    w2_rows = jnp.zeros((8, hidden), jnp.float32).at[0].set(
        w2.reshape(hidden).astype(jnp.float32))
    b2_2d = b2.reshape(1, 1).astype(jnp.float32)

    feat_specs = [pl.BlockSpec((tile_e, c), lambda i: (i, 0)) for c in c_sizes]
    full_specs = [pl.BlockSpec(a.shape, lambda i: (0, 0))
                  for a in (*w1_blocks, b1_2d, w2_rows, b2_2d)]

    out = pl.pallas_call(
        _predictor_kernel,
        out_shape=jax.ShapeDtypeStruct((1, e_pad), jnp.float32),
        grid_spec=pltpu.PrefetchScalarGridSpec(
            num_scalar_prefetch=0,
            grid=(n_tiles,),
            in_specs=feat_specs + full_specs,
            out_specs=pl.BlockSpec((1, tile_e), lambda i: (0, i)),
        ),
        compiler_params=pltpu.CompilerParams(
            dimension_semantics=("parallel",)),
    )(*feats, *w1_blocks, b1_2d, w2_rows, b2_2d)

    # Strip padding; return the (E, 1) logits (sigmoid never applied, as in
    # the original forward()).
    return out[0, :E].reshape(E, 1)


if __name__ == "__main__":
    key = jax.random.PRNGKey(0)

    # Small synthetic shapes: ragged edge count exercises padding + multi-tile grid.
    E = 300
    C_NODE = 16     # dim of 'new_n_f'
    C_LANG = 16     # dim of 'new_n_f_lang'
    C_SF = 16       # dim of edge feature 's_f'
    D_IN = 2 * C_NODE + 2 * C_LANG + C_SF   # 80 = G_ER_L_S[0]
    HIDDEN = 32                              # G_ER_L_S[1]
    D_OUT = 1                                # G_ER_L_S[-1]

    ks = jax.random.split(key, 9)
    dst_f    = jax.random.normal(ks[0], (E, C_NODE), jnp.float32)
    dst_lang = jax.random.normal(ks[1], (E, C_LANG), jnp.float32)
    s_f      = jax.random.normal(ks[2], (E, C_SF),   jnp.float32)
    src_lang = jax.random.normal(ks[3], (E, C_LANG), jnp.float32)
    src_f    = jax.random.normal(ks[4], (E, C_NODE), jnp.float32)

    w1 = jax.random.normal(ks[5], (D_IN, HIDDEN), jnp.float32) * 0.1
    b1 = jax.random.normal(ks[6], (1, HIDDEN),    jnp.float32) * 0.1
    w2 = jax.random.normal(ks[7], (HIDDEN, D_OUT), jnp.float32) * 0.1
    b2 = jax.random.normal(ks[8], (1, D_OUT),      jnp.float32) * 0.1

    pred = predictor_forward(dst_f, dst_lang, s_f, src_lang, src_f,
                             w1, b1, w2, b2)
    pred = jax.block_until_ready(pred)

    # Pure-JAX reference using the same bf16-MXU-operand scheme.
    feat_bf = jnp.concatenate(
        [x.astype(jnp.bfloat16) for x in (dst_f, dst_lang, s_f, src_lang, src_f)],
        axis=1)
    h_ref = jnp.maximum(
        jnp.dot(feat_bf, w1.astype(jnp.bfloat16),
                preferred_element_type=jnp.float32) + b1, 0.0)
    pred_ref = h_ref @ w2 + b2

    assert pred.shape == (E, D_OUT)
    err = float(jnp.max(jnp.abs(pred - pred_ref)))
    assert jnp.allclose(pred, pred_ref, atol=2e-2, rtol=2e-2), err

    print("KERNEL_OK")
</pallas_src>

<mosaic_0001>
module attributes {stable_mosaic.version = 11 : i64} {
  func.func @_predictor_kernel(%arg0: i32, %arg1: memref<256x16xbf16, #tpu.memory_space<vmem>>, %arg2: memref<256x16xbf16, #tpu.memory_space<vmem>>, %arg3: memref<256x16xbf16, #tpu.memory_space<vmem>>, %arg4: memref<256x16xbf16, #tpu.memory_space<vmem>>, %arg5: memref<256x16xbf16, #tpu.memory_space<vmem>>, %arg6: memref<16x32xbf16, #tpu.memory_space<vmem>>, %arg7: memref<16x32xbf16, #tpu.memory_space<vmem>>, %arg8: memref<16x32xbf16, #tpu.memory_space<vmem>>, %arg9: memref<16x32xbf16, #tpu.memory_space<vmem>>, %arg10: memref<16x32xbf16, #tpu.memory_space<vmem>>, %arg11: memref<1x32xf32, #tpu.memory_space<vmem>>, %arg12: memref<8x32xf32, #tpu.memory_space<vmem>>, %arg13: memref<1x1xf32, #tpu.memory_space<vmem>>, %arg14: memref<1x256xf32, #tpu.memory_space<vmem>>) attributes {dimension_semantics = [#tpu.dimension_semantics<parallel>], iteration_bounds = array<i64: 2>, scalar_prefetch = 0 : i64, scratch_operands = 0 : i64, tpu.core_type = #tpu.core_type<tc>, window_params = [{transform_indices = @transform_0, window_bounds = array<i64: 256, 16>}, {transform_indices = @transform_1, window_bounds = array<i64: 256, 16>}, {transform_indices = @transform_2, window_bounds = array<i64: 256, 16>}, {transform_indices = @transform_3, window_bounds = array<i64: 256, 16>}, {transform_indices = @transform_4, window_bounds = array<i64: 256, 16>}, {pipeline_mode = #tpu.pipeline_mode<synchronous>, transform_indices = @transform_5, window_bounds = array<i64: 16, 32>}, {pipeline_mode = #tpu.pipeline_mode<synchronous>, transform_indices = @transform_6, window_bounds = array<i64: 16, 32>}, {pipeline_mode = #tpu.pipeline_mode<synchronous>, transform_indices = @transform_7, window_bounds = array<i64: 16, 32>}, {pipeline_mode = #tpu.pipeline_mode<synchronous>, transform_indices = @transform_8, window_bounds = array<i64: 16, 32>}, {pipeline_mode = #tpu.pipeline_mode<synchronous>, transform_indices = @transform_9, window_bounds = array<i64: 16, 32>}, {pipeline_mode = #tpu.pipeline_mode<synchronous>, transform_indices = @transform_10, window_bounds = array<i64: 1, 32>}, {pipeline_mode = #tpu.pipeline_mode<synchronous>, transform_indices = @transform_11, window_bounds = array<i64: 8, 32>}, {pipeline_mode = #tpu.pipeline_mode<synchronous>, transform_indices = @transform_12, window_bounds = array<i64: 1, 1>}, {transform_indices = @transform_13, window_bounds = array<i64: 1, 256>}]} {
    %c0 = arith.constant 0 : index
    %c0_0 = arith.constant 0 : index
    %0 = vector.load %arg1[%c0, %c0_0] : memref<256x16xbf16, #tpu.memory_space<vmem>>, vector<256x16xbf16>
    %c0_1 = arith.constant 0 : index
    %c0_2 = arith.constant 0 : index
    %1 = vector.load %arg6[%c0_1, %c0_2] : memref<16x32xbf16, #tpu.memory_space<vmem>>, vector<16x32xbf16>
    %cst = arith.constant dense<0.000000e+00> : vector<256x32xf32>
    %2 = tpu.matmul %0, %1, %cst {dimension_numbers = #tpu.dot_dimension_numbers<[1], [0], [0], [1], [0, 0, 1, 1], [], []>} : vector<256x16xbf16>, vector<16x32xbf16>, vector<256x32xf32> -> vector<256x32xf32>
    %c0_3 = arith.constant 0 : index
    %c0_4 = arith.constant 0 : index
    %3 = vector.load %arg2[%c0_3, %c0_4] : memref<256x16xbf16, #tpu.memory_space<vmem>>, vector<256x16xbf16>
    %c0_5 = arith.constant 0 : index
    %c0_6 = arith.constant 0 : index
    %4 = vector.load %arg7[%c0_5, %c0_6] : memref<16x32xbf16, #tpu.memory_space<vmem>>, vector<16x32xbf16>
    %cst_7 = arith.constant dense<0.000000e+00> : vector<256x32xf32>
    %5 = tpu.matmul %3, %4, %cst_7 {dimension_numbers = #tpu.dot_dimension_numbers<[1], [0], [0], [1], [0, 0, 1, 1], [], []>} : vector<256x16xbf16>, vector<16x32xbf16>, vector<256x32xf32> -> vector<256x32xf32>
    %6 = arith.addf %2, %5 : vector<256x32xf32>
    %c0_8 = arith.constant 0 : index
    %c0_9 = arith.constant 0 : index
    %7 = vector.load %arg3[%c0_8, %c0_9] : memref<256x16xbf16, #tpu.memory_space<vmem>>, vector<256x16xbf16>
    %c0_10 = arith.constant 0 : index
    %c0_11 = arith.constant 0 : index
    %8 = vector.load %arg8[%c0_10, %c0_11] : memref<16x32xbf16, #tpu.memory_space<vmem>>, vector<16x32xbf16>
    %cst_12 = arith.constant dense<0.000000e+00> : vector<256x32xf32>
    %9 = tpu.matmul %7, %8, %cst_12 {dimension_numbers = #tpu.dot_dimension_numbers<[1], [0], [0], [1], [0, 0, 1, 1], [], []>} : vector<256x16xbf16>, vector<16x32xbf16>, vector<256x32xf32> -> vector<256x32xf32>
    %10 = arith.addf %6, %9 : vector<256x32xf32>
    %c0_13 = arith.constant 0 : index
    %c0_14 = arith.constant 0 : index
    %11 = vector.load %arg4[%c0_13, %c0_14] : memref<256x16xbf16, #tpu.memory_space<vmem>>, vector<256x16xbf16>
    %c0_15 = arith.constant 0 : index
    %c0_16 = arith.constant 0 : index
    %12 = vector.load %arg9[%c0_15, %c0_16] : memref<16x32xbf16, #tpu.memory_space<vmem>>, vector<16x32xbf16>
    %cst_17 = arith.constant dense<0.000000e+00> : vector<256x32xf32>
    %13 = tpu.matmul %11, %12, %cst_17 {dimension_numbers = #tpu.dot_dimension_numbers<[1], [0], [0], [1], [0, 0, 1, 1], [], []>} : vector<256x16xbf16>, vector<16x32xbf16>, vector<256x32xf32> -> vector<256x32xf32>
    %14 = arith.addf %10, %13 : vector<256x32xf32>
    %c0_18 = arith.constant 0 : index
    %c0_19 = arith.constant 0 : index
    %15 = vector.load %arg5[%c0_18, %c0_19] : memref<256x16xbf16, #tpu.memory_space<vmem>>, vector<256x16xbf16>
    %c0_20 = arith.constant 0 : index
    %c0_21 = arith.constant 0 : index
    %16 = vector.load %arg10[%c0_20, %c0_21] : memref<16x32xbf16, #tpu.memory_space<vmem>>, vector<16x32xbf16>
    %cst_22 = arith.constant dense<0.000000e+00> : vector<256x32xf32>
    %17 = tpu.matmul %15, %16, %cst_22 {dimension_numbers = #tpu.dot_dimension_numbers<[1], [0], [0], [1], [0, 0, 1, 1], [], []>} : vector<256x16xbf16>, vector<16x32xbf16>, vector<256x32xf32> -> vector<256x32xf32>
    %18 = arith.addf %14, %17 : vector<256x32xf32>
    %c0_23 = arith.constant 0 : index
    %c0_24 = arith.constant 0 : index
    %19 = vector.load %arg11[%c0_23, %c0_24] : memref<1x32xf32, #tpu.memory_space<vmem>>, vector<1x32xf32>
    %20 = vector.broadcast %19 : vector<1x32xf32> to vector<256x32xf32>
    %21 = arith.addf %18, %20 : vector<256x32xf32>
    %cst_25 = arith.constant 0.000000e+00 : f32
    %22 = vector.broadcast %cst_25 : f32 to vector<256x32xf32>
    %23 = arith.maximumf %21, %22 : vector<256x32xf32>
    %c0_26 = arith.constant 0 : index
    %c0_27 = arith.constant 0 : index
    %24 = vector.load %arg12[%c0_26, %c0_27] : memref<8x32xf32, #tpu.memory_space<vmem>>, vector<8x32xf32>
    %cst_28 = arith.constant dense<0.000000e+00> : vector<8x256xf32>
    %25 = tpu.matmul %24, %23, %cst_28 {dimension_numbers = #tpu.dot_dimension_numbers<[1], [1], [0], [0], [0, 0, 1, 0], [], []>} : vector<8x32xf32>, vector<256x32xf32>, vector<8x256xf32> -> vector<8x256xf32>
    %26 = vector.extract_strided_slice %25 {offsets = [0, 0], sizes = [1, 256], strides = [1, 1]} : vector<8x256xf32> to vector<1x256xf32>
    %c0_29 = arith.constant 0 : index
    %c0_30 = arith.constant 0 : index
    %27 = vector.load %arg13[%c0_29, %c0_30] : memref<1x1xf32, #tpu.memory_space<vmem>>, vector<1x1xf32>
    %28 = vector.broadcast %27 : vector<1x1xf32> to vector<1x256xf32>
    %29 = arith.addf %26, %28 : vector<1x256xf32>
    %c0_31 = arith.constant 0 : index
    %c0_32 = arith.constant 0 : index
    %30 = vector.load %arg14[%c0_31, %c0_32] : memref<1x256xf32, #tpu.memory_space<vmem>>, vector<1x256xf32>
    tpu.vector_store %arg14[%c0_31, %c0_32], %29 {strides = array<i32>} : memref<1x256xf32, #tpu.memory_space<vmem>>, vector<1x256xf32>,
    return
  }
  func.func @transform_0(%arg0: i32) -> (i32, i32) {
    %c0_i32 = arith.constant 0 : i32
    %c0_i32_0 = arith.constant 0 : i32
    return %arg0, %c0_i32 : i32, i32
  }
  func.func @transform_1(%arg0: i32) -> (i32, i32) {
    %c0_i32 = arith.constant 0 : i32
    %c0_i32_0 = arith.constant 0 : i32
    return %arg0, %c0_i32 : i32, i32
  }
  func.func @transform_2(%arg0: i32) -> (i32, i32) {
    %c0_i32 = arith.constant 0 : i32
    %c0_i32_0 = arith.constant 0 : i32
    return %arg0, %c0_i32 : i32, i32
  }
  func.func @transform_3(%arg0: i32) -> (i32, i32) {
    %c0_i32 = arith.constant 0 : i32
    %c0_i32_0 = arith.constant 0 : i32
    return %arg0, %c0_i32 : i32, i32
  }
  func.func @transform_4(%arg0: i32) -> (i32, i32) {
    %c0_i32 = arith.constant 0 : i32
    %c0_i32_0 = arith.constant 0 : i32
    return %arg0, %c0_i32 : i32, i32
  }
  func.func @transform_5(%arg0: i32) -> (i32, i32) {
    %c0_i32 = arith.constant 0 : i32
    %c0_i32_0 = arith.constant 0 : i32
    %c0_i32_1 = arith.constant 0 : i32
    return %c0_i32, %c0_i32_0 : i32, i32
  }
  func.func @transform_6(%arg0: i32) -> (i32, i32) {
    %c0_i32 = arith.constant 0 : i32
    %c0_i32_0 = arith.constant 0 : i32
    %c0_i32_1 = arith.constant 0 : i32
    return %c0_i32, %c0_i32_0 : i32, i32
  }
  func.func @transform_7(%arg0: i32) -> (i32, i32) {
    %c0_i32 = arith.constant 0 : i32
    %c0_i32_0 = arith.constant 0 : i32
    %c0_i32_1 = arith.constant 0 : i32
    return %c0_i32, %c0_i32_0 : i32, i32
  }
  func.func @transform_8(%arg0: i32) -> (i32, i32) {
    %c0_i32 = arith.constant 0 : i32
    %c0_i32_0 = arith.constant 0 : i32
    %c0_i32_1 = arith.constant 0 : i32
    return %c0_i32, %c0_i32_0 : i32, i32
  }
  func.func @transform_9(%arg0: i32) -> (i32, i32) {
    %c0_i32 = arith.constant 0 : i32
    %c0_i32_0 = arith.constant 0 : i32
    %c0_i32_1 = arith.constant 0 : i32
    return %c0_i32, %c0_i32_0 : i32, i32
  }
  func.func @transform_10(%arg0: i32) -> (i32, i32) {
    %c0_i32 = arith.constant 0 : i32
    %c0_i32_0 = arith.constant 0 : i32
    %c0_i32_1 = arith.constant 0 : i32
    return %c0_i32, %c0_i32_0 : i32, i32
  }
  func.func @transform_11(%arg0: i32) -> (i32, i32) {
    %c0_i32 = arith.constant 0 : i32
    %c0_i32_0 = arith.constant 0 : i32
    %c0_i32_1 = arith.constant 0 : i32
    return %c0_i32, %c0_i32_0 : i32, i32
  }
  func.func @transform_12(%arg0: i32) -> (i32, i32) {
    %c0_i32 = arith.constant 0 : i32
    %c0_i32_0 = arith.constant 0 : i32
    %c0_i32_1 = arith.constant 0 : i32
    return %c0_i32, %c0_i32_0 : i32, i32
  }
  func.func @transform_13(%arg0: i32) -> (i32, i32) {
    %c0_i32 = arith.constant 0 : i32
    %c0_i32_0 = arith.constant 0 : i32
    return %c0_i32, %arg0 : i32, i32
  }
}

</mosaic_0001>

<bundles_post_ra>
// kernel: tpu_custom_call.1
= control target key start
LH: loop header
LB: loop body
LE: loop exit
PB: predicated region body
PF: predicated region fallthrough
CT: control target
= control target key end

     0   :  { %s4056_s0 = inlined_call_operand.vmem [shape: bf16[512,16], index: 0, kind: input, shape index: {}]   ;;  %s4057_s1 = inlined_call_operand.vmem [shape: bf16[512,16], index: 1, kind: input, shape index: {}]   ;;  %s4058_s2 = inlined_call_operand.vmem [shape: bf16[512,16], index: 2, kind: input, shape index: {}]   ;;  %s4059_s3 = inlined_call_operand.vmem [shape: bf16[512,16], index: 3, kind: input, shape index: {}]   ;;  %s4060_s4 = inlined_call_operand.vmem [shape: bf16[512,16], index: 4, kind: input, shape index: {}]   ;;  %s4061_s5 = inlined_call_operand.vmem [shape: bf16[16,32], index: 5, kind: input, shape index: {}]   ;;  %s4062_s6 = inlined_call_operand.vmem [shape: bf16[16,32], index: 6, kind: input, shape index: {}]   ;;  %s4063_s7 = inlined_call_operand.vmem [shape: bf16[16,32], index: 7, kind: input, shape index: {}]   ;;  %s4064_s8 = inlined_call_operand.vmem [shape: bf16[16,32], index: 8, kind: input, shape index: {}]   ;;  %s4065_s9 = inlined_call_operand.vmem [shape: bf16[16,32], index: 9, kind: input, shape index: {}]   ;;  %s4066_s10 = inlined_call_operand.vmem [shape: f32[1,32], index: 10, kind: input, shape index: {}]   ;;  %s4067_s11 = inlined_call_operand.vmem [shape: f32[8,32], index: 11, kind: input, shape index: {}]   ;;  %s4068_s12 = inlined_call_operand.<no memory space> [shape: f32[1,1], index: 12, kind: input, shape index: {}]   ;;  %s4069_s13 = inlined_call_operand.hbm [shape: f32[1,512], index: 13, kind: output, shape index: {}]  }
   0x1   :  { %4071 = sst [smem:[#allocation20_spill]] %s4056_s0  ;;  %v18_v0 = vstv %s4068_s12 }
   0x2   :  { %4072 = sst [smem:[#allocation21_spill]] %s4057_s1  ;;  %19 = vst [vmem:[#allocation2] sm:$0x1] %v18_v0 }
   0x3   :  { %4073 = sst [smem:[#allocation22_spill]] %s4058_s2 }
   0x4   :  { %20 = vsyncpa [#allocation4], 0 }
   0x5   :  { %22 = vsyncpa [#allocation4 + $0x1], 0  ;;  %s3451_s27 = smov 0   ;;  %s3453_s28 = smov 0  }
   0x6   :  { %s3455_s29 = smov 0   ;;  %s3457_s30 = smov 0  }
   0x7 LB: > { %s2674_s12 = sadd.s32 4294967295, %s3373_s30   ;;  %s2675_s14 = sadd.s32 4294967294, %s3373_s30   ;;  %s3373_s30 = sphi %s3457_s30, %s4110_s30   ;;  %s3369_s29 = sphi %s3455_s29, %s4109_s29   ;;  %s3365_s28 = sphi %s3453_s28, %s4108_s28   ;;  %s3361_s27 = sphi %s3451_s27, %s4107_s27  }
   0x8   : > { %s3474_s15 = sadd.s32 1, %s3373_s30   ;;  %s333_s16 = sadd.s32 1, %s3369_s29 }
   0x9   : > { %s330_s17 = ssub.s32 %s3373_s30, %s3474_s15  ;;  %p343_p0 = scmp.ne.s32.totalorder %s3369_s29, %s3365_s28 }
   0xa   : > { %p331_p1 = scmp.eq.s32.totalorder %s330_s17, 0  ;;  %p344_p2 = scmp.eq.s32.totalorder %s2674_s12, 1 }
   0xb   : > { %p349_p3 = scmp.ne.s32.totalorder %s3365_s28, %s3361_s27  ;;  %p350_p4 = scmp.eq.s32.totalorder %s2675_s14, 1 }
   0xc   : > { %s3484_s18 = scalar_select %p331_p1, %s3369_s29, %s333_s16  }
   0xd   : > { %p3486_p5 = por %p344_p2, %p343_p0  ;;  %p3490_p6 = por %p350_p4, %p349_p3 }
   0xe   : > { %p2678_p7 = scmp.ge.s32.totalorder %s3373_s30, 1  ;;  %p437_p8 = scmp.lt.s32.totalorder %s3373_s30, 3 }
  0x10   : > { %p438_p9 = pnand %p2678_p7, %p437_p8 }
  0x12   : > { %441 = sbr.rel (%p438_p9) target bundleno = 675 (0x2a3), region = 72 }
  0x17   : > { %v3228_v1 = vld [vmem:[%s4062_s6] sm:$0xff]   ;;  %s3499_s23 = sshll.u32 %s2674_s12, 5  ;;  %s4076_s1 = sld [smem:[#allocation21_spill]]  ;;  %vm687_vm0 = vcmask 130048   ;;  %vm2347_vm1 = vcmask 261120  }
  0x18   : > { %p502_p10 = scmp.lt.s32.totalorder %s3499_s23, 63  ;;  %3014 = vmatprep.subr.bf16.mxu0 %v3228_v1  ;;  %3184 = vmatprep.subr.bf16.mxu1 %v3228_v1  ;;  %v3233_v2 = vld [vmem:[%s4063_s7] sm:$0xff]   ;;  %s4077_s0 = sld [smem:[#allocation20_spill]] }
  0x19   : > { %3015 = vmatpush3.bf16.msra.mxu0 %v3228_v1  ;;  %3185 = vmatpush3.bf16.msra.mxu1 %v3228_v1  ;;  %v3238_v3 = vld [vmem:[%s4061_s5] sm:$0xff]   ;;  %s4078_s2 = sld [smem:[#allocation22_spill]]  ;;  %s498_s14 = sand.u32 1, %s3365_s28  }
  0x1a   : > { %s503_s26 = scalar_select %p502_p10, %s3499_s23, 63  ;;  %3082 = vmatprep.subr.bf16.mxu0 %v3233_v2  ;;  %3048 = vmatprep.subr.bf16.mxu1 %v3238_v3  ;;  %v3251_v6 = vld [vmem:[%s4064_s8] sm:$0xff]  }
  0x1b   : > { %v3256_v8 = vld [vmem:[%s4065_s9] sm:$0xff]  }
  0x1c   : > { %s3509_s17 = sshll.u32 %s503_s26, 2 }
  0x1d   : > { %s3515_s22 = scalar_lea.vmem %s4076_s1, %s3509_s17  ;;  %s3588_s16 = scalar_lea.vmem %s4059_s3, %s3509_s17 }
  0x1e   : > { %v3229_v4 = vld [vmem:[%s3515_s22] sm:$0xff]   ;;  %v3230_v5 = vld [vmem:[%s3515_s22 + $0x50] sm:$0xff]   ;;  %v3231_v7 = vld [vmem:[%s3515_s22 + $0x8] sm:$0xff]   ;;  %s3544_s21 = scalar_lea.vmem %s4077_s0, %s3509_s17  ;;  %s3602_s25 = scalar_lea.vmem %s4060_s4, %s3509_s17 }
  0x1f   : > { %3016 = vmatprep.mubr.msk.bf16.mxu0 %vm687_vm0, %v3229_v4  ;;  %3036 = vmatprep.mubr.msk.bf16.mxu1 %vm687_vm0, %v3230_v5  ;;  %v3232_v9 = vld [vmem:[%s3515_s22 + $0x58] sm:$0xff]   ;;  %v3234_v10 = vld [vmem:[%s3515_s22 + $0x10] sm:$0xff]   ;;  %v3235_v11 = vld [vmem:[%s3515_s22 + $0x60] sm:$0xff]   ;;  %s3558_s26 = scalar_lea.vmem %s4078_s2, %s3509_s17  ;;  %s3377_s0 = smov [#allocation3]  }
  0x20   : > { %3017 = vmatmul.mubr.msk.bf16.vlgmr.msra.gmra.mxu0 %vm687_vm0, %v3231_v7  ;;  %3037 = vmatmul.mubr.msk.bf16.vlgmr.msra.gmra.mxu1 %vm687_vm0, %v3232_v9  ;;  %v3236_v12 = vld [vmem:[%s3515_s22 + $0x18] sm:$0xff]   ;;  %v3237_v13 = vld [vmem:[%s3515_s22 + $0x68] sm:$0xff]   ;;  %v3239_v14 = vld [vmem:[%s3515_s22 + $0x20] sm:$0xff]   ;;  %s3317_s1 = sshll.u32 %s3377_s0, 4  ;;  %s3318_s1 = int_to_ptr.vmem [resolvable:$false] %s3317_s1 }
  0x21   : > { %3083 = vmatpush3.bf16.msra.mxu0 %v3233_v2  ;;  %3020 = vmatprep.mubr.msk.bf16.mxu0 %vm687_vm0, %v3234_v10  ;;  %v3240_v15 = vld [vmem:[%s3515_s22 + $0x70] sm:$0xff]   ;;  %v3241_v16 = vld [vmem:[%s3515_s22 + $0x28] sm:$0xff]   ;;  %v3242_v17 = vld [vmem:[%s3515_s22 + $0x78] sm:$0xff]  }
  0x22   : > { %3049 = vmatpush3.bf16.msra.mxu1 %v3238_v3  ;;  %3040 = vmatprep.mubr.msk.bf16.mxu1 %vm687_vm0, %v3235_v11  ;;  %v3243_v18 = vld [vmem:[%s3515_s22 + $0x30] sm:$0xff]   ;;  %v3244_v19 = vld [vmem:[%s3544_s21] sm:$0xff]   ;;  %v3245_v20 = vld [vmem:[%s3515_s22 + $0x38] sm:$0xff]  }
  0x23   : > { %3116 = vmatprep.subr.bf16.mxu1 %v3251_v6  ;;  %3150 = vmatprep.subr.bf16.mxu0 %v3256_v8  ;;  %v3246_v21 = vld [vmem:[%s3544_s21 + $0x8] sm:$0xff]   ;;  %v3247_v22 = vld [vmem:[%s3515_s22 + $0x40] sm:$0xff]   ;;  %v3248_v23 = vld [vmem:[%s3544_s21 + $0x10] sm:$0xff]  }
  0x24   : > { %v3249_v24 = vld [vmem:[%s3515_s22 + $0x48] sm:$0xff]   ;;  %v3250_v25 = vld [vmem:[%s3544_s21 + $0x18] sm:$0xff]   ;;  %v3253_v26 = vld [vmem:[%s3558_s26] sm:$0xff]  }
  0x25   : > { %v3252_v27 = vld [vmem:[%s3544_s21 + $0x20] sm:$0xff]   ;;  %v3254_v28 = vld [vmem:[%s3544_s21 + $0x28] sm:$0xff]   ;;  %v3257_v30 = vld [vmem:[%s3544_s21 + $0x30] sm:$0xff]  }
  0x26   : > { %v3255_v29 = vld [vmem:[%s3558_s26 + $0x8] sm:$0xff]   ;;  %v3258_v31 = vld [vmem:[%s3558_s26 + $0x10] sm:$0xff]   ;;  %v3259_v32 = vld [vmem:[%s3544_s21 + $0x38] sm:$0xff]  }
  0x27   : > { %v3260_v33 = vld [vmem:[%s3558_s26 + $0x18] sm:$0xff]   ;;  %v3262_v34 = vld [vmem:[%s3558_s26 + $0x20] sm:$0xff]   ;;  %v3263_v36 = vld [vmem:[%s3544_s21 + $0x48] sm:$0xff]  }
  0x28   : > { %3021 = vmatmul.mubr.msk.bf16.gmra.mxu0 %vm687_vm0, %v3236_v12  ;;  %3041 = vmatmul.mubr.msk.bf16.gmra.mxu1 %vm687_vm0, %v3237_v13  ;;  %v3261_v35 = vld [vmem:[%s3544_s21 + $0x40] sm:$0xff]   ;;  %v3264_v37 = vld [vmem:[%s3558_s26 + $0x28] sm:$0xff]   ;;  %v3266_v38 = vld [vmem:[%s3558_s26 + $0x30] sm:$0xff]  }
  0x29   : > { %3024 = vmatprep.mubr.msk.bf16.mxu0 %vm687_vm0, %v3239_v14  ;;  %3044 = vmatprep.mubr.msk.bf16.mxu1 %vm687_vm0, %v3240_v15  ;;  %v3265_v39 = vld [vmem:[%s3544_s21 + $0x50] sm:$0xff]   ;;  %v3267_v40 = vld [vmem:[%s3544_s21 + $0x58] sm:$0xff]   ;;  %v3270_v42 = vld [vmem:[%s3558_s26 + $0x40] sm:$0xff]  }
  0x2a   : > { %v3268_v41 = vld [vmem:[%s3558_s26 + $0x38] sm:$0xff]   ;;  %v3269_v43 = vld [vmem:[%s3544_s21 + $0x60] sm:$0xff]   ;;  %v3271_v44 = vld [vmem:[%s3544_s21 + $0x68] sm:$0xff]  }
  0x2b   : > { %v3272_v45 = vld [vmem:[%s3558_s26 + $0x48] sm:$0xff]   ;;  %v3274_v46 = vld [vmem:[%s3558_s26 + $0x50] sm:$0xff]   ;;  %v3276_v48 = vld [vmem:[%s3558_s26 + $0x58] sm:$0xff]  }
  0x2c   : > { %v3273_v47 = vld [vmem:[%s3544_s21 + $0x70] sm:$0xff]   ;;  %v3275_v49 = vld [vmem:[%s3544_s21 + $0x78] sm:$0xff]   ;;  %v3277_v50 = vld [vmem:[%s3558_s26 + $0x60] sm:$0xff]   ;;  %s2566_s21 = scalar_lea.hbm %s4069_s13, %s3499_s23 }
  0x2d   : > { %v3278_v51 = vld [vmem:[%s3588_s16] sm:$0xff]   ;;  %v3279_v52 = vld [vmem:[%s3558_s26 + $0x68] sm:$0xff]   ;;  %v3281_v54 = vld [vmem:[%s3558_s26 + $0x70] sm:$0xff]  }
  0x2e   : > { %v3280_v53 = vld [vmem:[%s3588_s16 + $0x8] sm:$0xff]   ;;  %v3282_v55 = vld [vmem:[%s3588_s16 + $0x10] sm:$0xff]   ;;  %v3283_v56 = vld [vmem:[%s3558_s26 + $0x78] sm:$0xff]   ;;  %s2554_s26 = scalar_lea.sflag [#allocation4], %s498_s14 }
  0x2f   : > { %v3284_v57 = vld [vmem:[%s3588_s16 + $0x18] sm:$0xff]   ;;  %v3286_v58 = vld [vmem:[%s3602_s25] sm:$0xff]   ;;  %v3288_v60 = vld [vmem:[%s3602_s25 + $0x8] sm:$0xff]  }
  0x30   : > { %3025 = vmatmul.mubr.msk.bf16.gmra.mxu0 %vm687_vm0, %v3241_v16  ;;  %3045 = vmatmul.mubr.msk.bf16.gmra.mxu1 %vm687_vm0, %v3242_v17  ;;  %v3285_v59 = vld [vmem:[%s3588_s16 + $0x20] sm:$0xff]   ;;  %v3287_v61 = vld [vmem:[%s3588_s16 + $0x28] sm:$0xff]   ;;  %v3290_v62 = vld [vmem:[%s3602_s25 + $0x10] sm:$0xff]  }
  0x31   : > { %3028 = vmatprep.mubr.msk.bf16.mxu0 %vm687_vm0, %v3243_v18  ;;  %3050 = vmatprep.mubr.msk.bf16.mxu1 %vm687_vm0, %v3244_v19  ;;  %v3289_v63 = vld [vmem:[%s3588_s16 + $0x30] sm:$0xff]   ;;  %v3292_v0 = vld [vmem:[%s3602_s25 + $0x18] sm:$0xff]   ;;  %v3294_v2 = vld [vmem:[%s3602_s25 + $0x20] sm:$0xff]  }
  0x32   : > { %v3291_v1 = vld [vmem:[%s3588_s16 + $0x38] sm:$0xff]   ;;  %v3293_v3 = vld [vmem:[%s3588_s16 + $0x40] sm:$0xff]   ;;  %v3296_v4 = vld [vmem:[%s3602_s25 + $0x28] sm:$0xff]  }
  0x33   : > { %v3295_v5 = vld [vmem:[%s3588_s16 + $0x48] sm:$0xff]   ;;  %v3297_v7 = vld [vmem:[%s3588_s16 + $0x50] sm:$0xff]   ;;  %v3299_v9 = vld [vmem:[%s3588_s16 + $0x58] sm:$0xff]  }
  0x34   : > { %v3302_v10 = vld [vmem:[%s3602_s25 + $0x40] sm:$0xff]   ;;  %v3304_v12 = vld [vmem:[%s3602_s25 + $0x48] sm:$0xff]   ;;  %v3306_v14 = vld [vmem:[%s3602_s25 + $0x50] sm:$0xff]  }
  0x35   : > { %v3301_v11 = vld [vmem:[%s3588_s16 + $0x60] sm:$0xff]   ;;  %v3303_v13 = vld [vmem:[%s3588_s16 + $0x68] sm:$0xff]   ;;  %v3305_v15 = vld [vmem:[%s3588_s16 + $0x70] sm:$0xff]  }
  0x36   : > { %v3308_v16 = vld [vmem:[%s3602_s25 + $0x58] sm:$0xff]   ;;  %v3309_v18 = vld [vmem:[%s3602_s25 + $0x60] sm:$0xff]   ;;  %v3310_v19 = vld [vmem:[%s3602_s25 + $0x68] sm:$0xff]  }
  0x37   : > { %v3307_v17 = vld [vmem:[%s3588_s16 + $0x78] sm:$0xff]   ;;  %s2679_s16 = sshll.u32 %s498_s14, 1 }
  0x38   : > { %3029 = vmatmul.mubr.msk.bf16.gmra.mxu0 %vm687_vm0, %v3245_v20  ;;  %3051 = vmatmul.mubr.msk.bf16.vlgmr.msra.gmra.mxu1 %vm687_vm0, %v3246_v21  ;;  %v3311_v20 = vld [vmem:[%s3602_s25 + $0x70] sm:$0xff]   ;;  %v3312_v21 = vld [vmem:[%s3602_s25 + $0x78] sm:$0xff]   ;;  %s500_s12 = scalar_lea.vmem [#allocation3], %s2679_s16  ;;  %s3319_s16 = scalar_lea.vmem %s3318_s1, 64 }
  0x39   : > { %3032 = vmatprep.mubr.msk.bf16.mxu0 %vm687_vm0, %v3247_v22  ;;  %3054 = vmatprep.mubr.msk.bf16.mxu1 %vm687_vm0, %v3248_v23  ;;  %s2568_s24 = sshll.u32 %s500_s12, 4  ;;  %s2569_s24 = int_to_ptr.vmem [resolvable:$true] %s2568_s24 }
  0x3a   : > { %3117 = vmatpush3.bf16.msra.mxu1 %v3251_v6  ;;  %v3298_v6 = vld [vmem:[%s3602_s25 + $0x30] sm:$0xff]   ;;  %s3313_s22 = scalar_lea.vmem %s2569_s24, 32  ;;  %p3320_p0 = scmp.lt.s32.totalorder %s2569_s24, %s3318_s1 }
  0x3b   : > { %p3314_p11 = scmp.ne.s32.totalorder %s2569_s24, %s3313_s22  ;;  %p3321_p1 = scmp.lt.s32.totalorder %s3319_s16, %s3313_s22 }
  0x3d   : > { %p3315_p12 = pnand %p3314_p11, %p3486_p5  ;;  %p3322_p2 = por %p3321_p1, %p3320_p0 }
  0x3f   : > { %p3316_p13 = pneg %p3315_p12 }
  0x40   : > { %3033 = vmatmul.mubr.msk.bf16.gmra.mxu0 %vm687_vm0, %v3249_v24  ;;  %3055 = vmatmul.mubr.msk.bf16.gmra.mxu1 %vm687_vm0, %v3250_v25 }
  0x41   : > { %3084 = vmatprep.mubr.msk.bf16.mxu0 %vm687_vm0, %v3253_v26  ;;  %3058 = vmatprep.mubr.msk.bf16.mxu1 %vm687_vm0, %v3252_v27  ;;  %p3323_p3 = pnand %p3322_p2, %p3316_p13 }
  0x48   : > { %3085 = vmatmul.mubr.msk.bf16.vlgmr.msra.gmra.mxu0 %vm687_vm0, %v3255_v29  ;;  %3059 = vmatmul.mubr.msk.bf16.gmra.mxu1 %vm687_vm0, %v3254_v28 }
  0x49   : > { %3151 = vmatpush3.bf16.msra.mxu0 %v3256_v8  ;;  %3062 = vmatprep.mubr.msk.bf16.mxu1 %vm687_vm0, %v3257_v30  ;;  %v3300_v8 = vld [vmem:[%s3602_s25 + $0x38] sm:$0xff]  }
  0x4a   : > { %3088 = vmatprep.mubr.msk.bf16.mxu0 %vm687_vm0, %v3258_v31 }
  0x50   : > { %3089 = vmatmul.mubr.msk.bf16.gmra.mxu0 %vm687_vm0, %v3260_v33  ;;  %3063 = vmatmul.mubr.msk.bf16.gmra.mxu1 %vm687_vm0, %v3259_v32 }
  0x51   : > { %3092 = vmatprep.mubr.msk.bf16.mxu0 %vm687_vm0, %v3262_v34  ;;  %3066 = vmatprep.mubr.msk.bf16.mxu1 %vm687_vm0, %v3261_v35 }
  0x58   : > { %3093 = vmatmul.mubr.msk.bf16.gmra.mxu0 %vm687_vm0, %v3264_v37  ;;  %3067 = vmatmul.mubr.msk.bf16.gmra.mxu1 %vm687_vm0, %v3263_v36 }
  0x59   : > { %3096 = vmatprep.mubr.msk.bf16.mxu0 %vm687_vm0, %v3266_v38  ;;  %3070 = vmatprep.mubr.msk.bf16.mxu1 %vm687_vm0, %v3265_v39 }
  0x60   : > { %3097 = vmatmul.mubr.msk.bf16.gmra.mxu0 %vm687_vm0, %v3268_v41  ;;  %3071 = vmatmul.mubr.msk.bf16.gmra.mxu1 %vm687_vm0, %v3267_v40 }
  0x61   : > { %3100 = vmatprep.mubr.msk.bf16.mxu0 %vm687_vm0, %v3270_v42  ;;  %3074 = vmatprep.mubr.msk.bf16.mxu1 %vm687_vm0, %v3269_v43 }
  0x68   : > { %3101 = vmatmul.mubr.msk.bf16.gmra.mxu0 %vm687_vm0, %v3272_v45  ;;  %3075 = vmatmul.mubr.msk.bf16.gmra.mxu1 %vm687_vm0, %v3271_v44 }
  0x69   : > { %3104 = vmatprep.mubr.msk.bf16.mxu0 %vm687_vm0, %v3274_v46  ;;  %3078 = vmatprep.mubr.msk.bf16.mxu1 %vm687_vm0, %v3273_v47 }
  0x70   : > { %3105 = vmatmul.mubr.msk.bf16.gmra.mxu0 %vm687_vm0, %v3276_v48  ;;  %3079 = vmatmul.mubr.msk.bf16.gmra.mxu1 %vm687_vm0, %v3275_v49 }
  0x71   : > { %3108 = vmatprep.mubr.msk.bf16.mxu0 %vm687_vm0, %v3277_v50  ;;  %3118 = vmatprep.mubr.msk.bf16.mxu1 %vm687_vm0, %v3278_v51 }
  0x78   : > { %3109 = vmatmul.mubr.msk.bf16.gmra.mxu0 %vm687_vm0, %v3279_v52  ;;  %3119 = vmatmul.mubr.msk.bf16.vlgmr.msra.gmra.mxu1 %vm687_vm0, %v3280_v53 }
  0x79   : > { %3112 = vmatprep.mubr.msk.bf16.mxu0 %vm687_vm0, %v3281_v54  ;;  %3122 = vmatprep.mubr.msk.bf16.mxu1 %vm687_vm0, %v3282_v55 }
  0x80   : > { %3113 = vmatmul.mubr.msk.bf16.gmra.mxu0 %vm687_vm0, %v3283_v56  ;;  %3123 = vmatmul.mubr.msk.bf16.gmra.mxu1 %vm687_vm0, %v3284_v57 }
  0x81   : > { %3152 = vmatprep.mubr.msk.bf16.mxu0 %vm687_vm0, %v3286_v58  ;;  %3126 = vmatprep.mubr.msk.bf16.mxu1 %vm687_vm0, %v3285_v59 }
  0x88   : > { %3153 = vmatmul.mubr.msk.bf16.vlgmr.msra.gmra.mxu0 %vm687_vm0, %v3288_v60  ;;  %3127 = vmatmul.mubr.msk.bf16.gmra.mxu1 %vm687_vm0, %v3287_v61 }
  0x89   : > { %3156 = vmatprep.mubr.msk.bf16.mxu0 %vm687_vm0, %v3290_v62  ;;  %3130 = vmatprep.mubr.msk.bf16.mxu1 %vm687_vm0, %v3289_v63 }
  0x90   : > { %3157 = vmatmul.mubr.msk.bf16.gmra.mxu0 %vm687_vm0, %v3292_v0  ;;  %3131 = vmatmul.mubr.msk.bf16.gmra.mxu1 %vm687_vm0, %v3291_v1 }
  0x91   : > { %3160 = vmatprep.mubr.msk.bf16.mxu0 %vm687_vm0, %v3294_v2  ;;  %3134 = vmatprep.mubr.msk.bf16.mxu1 %vm687_vm0, %v3293_v3 }
  0x98   : > { %3161 = vmatmul.mubr.msk.bf16.gmra.mxu0 %vm687_vm0, %v3296_v4  ;;  %3135 = vmatmul.mubr.msk.bf16.gmra.mxu1 %vm687_vm0, %v3295_v5 }
  0x99   : > { %3164 = vmatprep.mubr.msk.bf16.mxu0 %vm687_vm0, %v3298_v6  ;;  %3138 = vmatprep.mubr.msk.bf16.mxu1 %vm687_vm0, %v3297_v7 }
  0xa0   : > { %3165 = vmatmul.mubr.msk.bf16.gmra.mxu0 %vm687_vm0, %v3300_v8  ;;  %3139 = vmatmul.mubr.msk.bf16.gmra.mxu1 %vm687_vm0, %v3299_v9 }
  0xa1   : > { %3168 = vmatprep.mubr.msk.bf16.mxu0 %vm687_vm0, %v3302_v10  ;;  %3142 = vmatprep.mubr.msk.bf16.mxu1 %vm687_vm0, %v3301_v11 }
  0xa8   : > { %3169 = vmatmul.mubr.msk.bf16.gmra.mxu0 %vm687_vm0, %v3304_v12  ;;  %3143 = vmatmul.mubr.msk.bf16.gmra.mxu1 %vm687_vm0, %v3303_v13 }
  0xa9   : > { %3172 = vmatprep.mubr.msk.bf16.mxu0 %vm687_vm0, %v3306_v14  ;;  %3146 = vmatprep.mubr.msk.bf16.mxu1 %vm687_vm0, %v3305_v15 }
  0xb0   : > { %3173 = vmatmul.mubr.msk.bf16.gmra.mxu0 %vm687_vm0, %v3308_v16  ;;  %3147 = vmatmul.mubr.msk.bf16.gmra.mxu1 %vm687_vm0, %v3307_v17 }
  0xb1   : > { %3176 = vmatprep.mubr.msk.bf16.mxu0 %vm687_vm0, %v3309_v18 }
  0xb8   : > { %3177 = vmatmul.mubr.msk.bf16.gmra.mxu0 %vm687_vm0, %v3310_v19 }
  0xb9   : > { %3180 = vmatprep.mubr.msk.bf16.mxu0 %vm687_vm0, %v3311_v20 }
  0xc0   : > { %3181 = vmatmul.mubr.msk.bf16.gmra.mxu0 %vm687_vm0, %v3312_v21 }
  0xe0   : > { %v3018_v22 = vpop.f32.mrf.mxu0  ;;  %v3707_v23 = vpop.f32.mrf.mxu1 }
  0xe2   : > { %v770_v24 = vpop.f32.mrf.mxu0  ;;  %v3709_v25 = vpop.f32.mrf.mxu1 }
  0xe4   : > { %v3019_v26 = vpop.f32.mrf.mxu0  ;;  %v3711_v27 = vpop.f32.mrf.mxu1 }
  0xe6   : > { %v773_v28 = vpop.f32.mrf.mxu0  ;;  %v3713_v29 = vpop.f32.mrf.mxu1 }
  0xe8   : > { %v3022_v30 = vpop.f32.mrf.mxu0  ;;  %v3715_v31 = vpop.f32.mrf.mxu1 }
  0xea   : > { %v786_v32 = vpop.f32.mrf.mxu0  ;;  %v3717_v33 = vpop.f32.mrf.mxu1 }
  0xec   : > { %v3023_v34 = vpop.f32.mrf.mxu0  ;;  %v3719_v35 = vpop.f32.mrf.mxu1 }
  0xee   : > { %v789_v36 = vpop.f32.mrf.mxu0  ;;  %v3721_v37 = vpop.f32.mrf.mxu1 }
  0xf0   : > { %v3026_v38 = vpop.f32.mrf.mxu0  ;;  %v3723_v39 = vpop.f32.mrf.mxu1 }
  0xf2   : > { %v802_v40 = vpop.f32.mrf.mxu0  ;;  %v3725_v41 = vpop.f32.mrf.mxu1 }
  0xf4   : > { %v3027_v42 = vpop.f32.mrf.mxu0  ;;  %v3727_v43 = vpop.f32.mrf.mxu1 }
  0xf6   : > { %v805_v44 = vpop.f32.mrf.mxu0  ;;  %v3729_v45 = vpop.f32.mrf.mxu1 }
  0xf8   : > { %v3030_v46 = vpop.f32.mrf.mxu0  ;;  %v3052_v47 = vpop.f32.mrf.mxu1 }
  0xf9   : > { %v1074_v48 = vadd.f32 %v3052_v47, %v3018_v22 }
  0xfa   : > { %v818_v49 = vpop.f32.mrf.mxu0  ;;  %v1065_v50 = vpop.f32.mrf.mxu1 }
  0xfb   : > { %v1066_v51 = vadd.f32 %v1065_v50, %v770_v24 }
  0xfc   : > { %v3031_v52 = vpop.f32.mrf.mxu0  ;;  %v3053_v53 = vpop.f32.mrf.mxu1 }
  0xfd   : > { %v1077_v54 = vadd.f32 %v3053_v53, %v3019_v26 }
  0xfe   : > { %v821_v55 = vpop.f32.mrf.mxu0  ;;  %v1068_v56 = vpop.f32.mrf.mxu1 }
  0xff   : > { %v1069_v57 = vadd.f32 %v1068_v56, %v773_v28 }
 0x100   : > { %v3034_v58 = vpop.f32.mrf.mxu0  ;;  %v3056_v59 = vpop.f32.mrf.mxu1 }
 0x101   : > { %v1090_v60 = vadd.f32 %v3056_v59, %v3022_v30 }
 0x102   : > { %v834_v61 = vpop.f32.mrf.mxu0  ;;  %v1081_v62 = vpop.f32.mrf.mxu1 }
 0x103   : > { %v1082_v63 = vadd.f32 %v1081_v62, %v786_v32 }
 0x104   : > { %v3035_v0 = vpop.f32.mrf.mxu0  ;;  %v3057_v1 = vpop.f32.mrf.mxu1 }
 0x105   : > { %v1093_v2 = vadd.f32 %v3057_v1, %v3023_v34 }
 0x106   : > { %v837_v3 = vpop.f32.mrf.mxu0  ;;  %v1084_v4 = vpop.f32.mrf.mxu1 }
 0x107   : > { %v1085_v5 = vadd.f32 %v1084_v4, %v789_v36 }
 0x108   : > { %v3086_v6 = vpop.f32.mrf.mxu0  ;;  %v3060_v7 = vpop.f32.mrf.mxu1 }
 0x109   : > { %v3731_v8 = vadd.f32 %v3086_v6, %v1074_v48  ;;  %v1106_v9 = vadd.f32 %v3060_v7, %v3026_v38 }
 0x10a   : > { %v1394_v10 = vpop.f32.mrf.mxu0  ;;  %v1097_v11 = vpop.f32.mrf.mxu1 }
 0x10b   : > { %v3733_v12 = vadd.f32 %v1394_v10, %v1066_v51  ;;  %v1098_v13 = vadd.f32 %v1097_v11, %v802_v40 }
 0x10c   : > { %v3087_v14 = vpop.f32.mrf.mxu0  ;;  %v3061_v15 = vpop.f32.mrf.mxu1 }
 0x10d   : > { %v3735_v16 = vadd.f32 %v3087_v14, %v1077_v54  ;;  %v1109_v17 = vadd.f32 %v3061_v15, %v3027_v42 }
 0x10e   : > { %v1397_v18 = vpop.f32.mrf.mxu0  ;;  %v1100_v19 = vpop.f32.mrf.mxu1 }
 0x10f   : > { %v3737_v20 = vadd.f32 %v1397_v18, %v1069_v57  ;;  %v1101_v21 = vadd.f32 %v1100_v19, %v805_v44 }
 0x110   : > { %v3090_v22 = vpop.f32.mrf.mxu0  ;;  %v3064_v24 = vpop.f32.mrf.mxu1 }
 0x111   : > { %v3739_v26 = vadd.f32 %v3090_v22, %v1090_v60  ;;  %v1122_v28 = vadd.f32 %v3064_v24, %v3030_v46 }
 0x112   : > { %v1410_v30 = vpop.f32.mrf.mxu0  ;;  %v1113_v32 = vpop.f32.mrf.mxu1 }
 0x113   : > { %v3741_v34 = vadd.f32 %v1410_v30, %v1082_v63  ;;  %v1114_v36 = vadd.f32 %v1113_v32, %v818_v49 }
 0x114   : > { %v3091_v38 = vpop.f32.mrf.mxu0  ;;  %v3065_v40 = vpop.f32.mrf.mxu1 }
 0x115   : > { %v3743_v47 = vadd.f32 %v3091_v38, %v1093_v2  ;;  %v1125_v42 = vadd.f32 %v3065_v40, %v3031_v52 }
 0x116   : > { %v1413_v48 = vpop.f32.mrf.mxu0  ;;  %v1116_v50 = vpop.f32.mrf.mxu1 }
 0x117   : > { %v3745_v51 = vadd.f32 %v1413_v48, %v1085_v5  ;;  %v1117_v44 = vadd.f32 %v1116_v50, %v821_v55 }
 0x118   : > { %v3094_v53 = vpop.f32.mrf.mxu0  ;;  %v3068_v54 = vpop.f32.mrf.mxu1 }
 0x119   : > { %v3747_v56 = vadd.f32 %v3094_v53, %v1106_v9  ;;  %v1138_v46 = vadd.f32 %v3068_v54, %v3034_v58 }
 0x11a   : > { %v1426_v57 = vpop.f32.mrf.mxu0  ;;  %v1129_v59 = vpop.f32.mrf.mxu1 }
 0x11b   : > { %v3749_v60 = vadd.f32 %v1426_v57, %v1098_v13  ;;  %v1130_v49 = vadd.f32 %v1129_v59, %v834_v61 }
 0x11c   : > { %v3095_v62 = vpop.f32.mrf.mxu0  ;;  %v3069_v63 = vpop.f32.mrf.mxu1 }
 0x11d   : > { %v3751_v1 = vadd.f32 %v3095_v62, %v1109_v17  ;;  %v1141_v52 = vadd.f32 %v3069_v63, %v3035_v0 }
 0x11e   : > { %v1429_v2 = vpop.f32.mrf.mxu0  ;;  %v1132_v4 = vpop.f32.mrf.mxu1 }
 0x11f   : > { %v3753_v5 = vadd.f32 %v1429_v2, %v1101_v21  ;;  %v1133_v55 = vadd.f32 %v1132_v4, %v837_v3 }
 0x120   : > { %v3098_v6 = vpop.f32.mrf.mxu0  ;;  %v3072_v7 = vpop.f32.mrf.mxu1 }
 0x121   : > { %v3755_v9 = vadd.f32 %v3098_v6, %v1122_v28  ;;  %v1154_v58 = vadd.f32 %v3072_v7, %v3707_v23 }
 0x122   : > { %v1442_v10 = vpop.f32.mrf.mxu0  ;;  %v1145_v11 = vpop.f32.mrf.mxu1 }
 0x123   : > { %v3758_v13 = vadd.f32 %v1442_v10, %v1114_v36  ;;  %v1146_v61 = vadd.f32 %v1145_v11, %v3709_v25 }
 0x124   : > { %v3099_v14 = vpop.f32.mrf.mxu0  ;;  %v3073_v15 = vpop.f32.mrf.mxu1 }
 0x125   : > { %v3761_v0 = vadd.f32 %v3099_v14, %v1125_v42  ;;  %v1157_v17 = vadd.f32 %v3073_v15, %v3711_v27 }
 0x126   : > { %v1445_v18 = vpop.f32.mrf.mxu0  ;;  %v1148_v3 = vpop.f32.mrf.mxu1 }
 0x127   : > { %v3764_v19 = vadd.f32 %v1445_v18, %v1117_v44  ;;  %v1149_v21 = vadd.f32 %v1148_v3, %v3713_v29 }
 0x128   : > { %v3102_v22 = vpop.f32.mrf.mxu0  ;;  %v3076_v23 = vpop.f32.mrf.mxu1 }
 0x129   : > { %v3767_v24 = vadd.f32 %v3102_v22, %v1138_v46  ;;  %v1170_v28 = vadd.f32 %v3076_v23, %v3715_v31 }
 0x12a   : > { %v1458_v30 = vpop.f32.mrf.mxu0  ;;  %v1161_v25 = vpop.f32.mrf.mxu1 }
 0x12b   : > { %v3770_v32 = vadd.f32 %v1458_v30, %v1130_v49  ;;  %v1162_v36 = vadd.f32 %v1161_v25, %v3717_v33 }
 0x12c   : > { %v3103_v38 = vpop.f32.mrf.mxu0  ;;  %v3077_v27 = vpop.f32.mrf.mxu1 }
 0x12d   : > { %v3773_v40 = vadd.f32 %v3103_v38, %v1141_v52  ;;  %v1173_v42 = vadd.f32 %v3077_v27, %v3719_v35 }
 0x12e   : > { %v1461_v48 = vpop.f32.mrf.mxu0  ;;  %v1164_v29 = vpop.f32.mrf.mxu1 }
 0x12f   : > { %v3776_v50 = vadd.f32 %v1461_v48, %v1133_v55  ;;  %v1165_v44 = vadd.f32 %v1164_v29, %v3721_v37 }
 0x130   : > { %v3106_v53 = vpop.f32.mrf.mxu0  ;;  %v3080_v31 = vpop.f32.mrf.mxu1 }
 0x131   : > { %v3779_v54 = vadd.f32 %v3106_v53, %v1154_v58  ;;  %v1186_v46 = vadd.f32 %v3080_v31, %v3723_v39 }
 0x132   : > { %v1474_v57 = vpop.f32.mrf.mxu0  ;;  %v1177_v33 = vpop.f32.mrf.mxu1 }
 0x133   : > { %v3782_v59 = vadd.f32 %v1474_v57, %v1146_v61  ;;  %v1178_v49 = vadd.f32 %v1177_v33, %v3725_v41 }
 0x134   : > { %v3107_v62 = vpop.f32.mrf.mxu0  ;;  %v3785_v35 = vpop.f32.mrf.mxu1 }
 0x135   : > { %v3787_v63 = vadd.f32 %v3107_v62, %v1157_v17  ;;  %v3375_v62 = vmov 0  }
 0x136   : > { %v1477_v52 = vpop.f32.mrf.mxu0  ;;  %v1180_v2 = vpop.f32.mrf.mxu1  ;;  %3227 = vset.pattern.permute.xlu0 %v3375_v62 }
 0x137   : > { %v3789_v37 = vadd.f32 %v1477_v52, %v1149_v21  ;;  %v1181_v4 = vadd.f32 %v1180_v2, %v3729_v45 }
 0x138   : > { %v3110_v55 = vpop.f32.mrf.mxu0  ;;  %v3120_v39 = vpop.f32.mrf.mxu1 }
 0x139   : > { %v3792_v6 = vadd.f32 %v3110_v55, %v1170_v28  ;;  %v1884_v7 = vadd.f32 %v3120_v39, %v3731_v8 }
 0x13a   : > { %v1490_v58 = vpop.f32.mrf.mxu0  ;;  %v1755_v41 = vpop.f32.mrf.mxu1 }
 0x13b   : > { %v3795_v10 = vadd.f32 %v1490_v58, %v1162_v36  ;;  %v1882_v11 = vadd.f32 %v1755_v41, %v3733_v12 }
 0x13c   : > { %v3111_v61 = vpop.f32.mrf.mxu0  ;;  %v3121_v15 = vpop.f32.mrf.mxu1 }
 0x13d   : > { %v3798_v14 = vadd.f32 %v3111_v61, %v1173_v42  ;;  %v1885_v17 = vadd.f32 %v3121_v15, %v3735_v16 }
 0x13e   : > { %v1493_v18 = vpop.f32.mrf.mxu0  ;;  %v1758_v3 = vpop.f32.mrf.mxu1 }
 0x13f   : > { %v3801_v45 = vadd.f32 %v1493_v18, %v1165_v44  ;;  %v1883_v21 = vadd.f32 %v1758_v3, %v3737_v20 }
 0x140   : > { %v3114_v22 = vpop.f32.mrf.mxu0  ;;  %v3124_v23 = vpop.f32.mrf.mxu1 }
 0x141   : > { %v3804_v8 = vadd.f32 %v3114_v22, %v1186_v46  ;;  %v1888_v28 = vadd.f32 %v3124_v23, %v3739_v26  ;;  %v3819_v26 = vld [vmem:[%s4067_s11] sm:$0xff] }
 0x142   : > { %v1506_v30 = vpop.f32.mrf.mxu0  ;;  %v1771_v25 = vpop.f32.mrf.mxu1  ;;  %4079 = vst [vmem:[#allocation6_spill] sm:$0xff] %v3819_v26  ;;  %3012 = vmatprep.mubr.msk.f32.mxu1 %vm2347_vm1, %v3819_v26 }
 0x143   : > { %v3807_v12 = vadd.f32 %v1506_v30, %v1178_v49  ;;  %v1886_v36 = vadd.f32 %v1771_v25, %v3741_v34 }
 0x144   : > { %v3810_v38 = vpop.f32.mrf.mxu0  ;;  %v3125_v16 = vpop.f32.mrf.mxu1 }
 0x145   : > { %v1889_v27 = vadd.f32 %v3125_v16, %v3743_v47 }
 0x146   : > { %v1509_v42 = vpop.f32.mrf.mxu0  ;;  %v1774_v20 = vpop.f32.mrf.mxu1 }
 0x147   : > { %v3813_v48 = vadd.f32 %v1509_v42, %v1181_v4  ;;  %v1887_v29 = vadd.f32 %v1774_v20, %v3745_v51  ;;  %v2518_v51 = vld [vmem:[#allocation2] sm:$0x1] }
 0x148   : > { %v3154_v44 = vpop.f32.mrf.mxu0  ;;  %v3128_v53 = vpop.f32.mrf.mxu1  ;;  %2521 = vperm.xlu0 %3227, %v2518_v51  }
 0x149   : > { %v3821_v34 = vadd.f32 %v3154_v44, %v1884_v7  ;;  %v1892_v47 = vadd.f32 %v3128_v53, %v3747_v56 }
 0x14a   : > { %v2116_v31 = vpop.f32.mrf.mxu0  ;;  %v1787_v46 = vpop.f32.mrf.mxu1 }
 0x14b   : > { %4080 = vst [vmem:[#allocation7_spill] sm:$0xff] %v3821_v34  ;;  %v3826_v57 = vadd.f32 %v2116_v31, %v1882_v11  ;;  %v1890_v33 = vadd.f32 %v1787_v46, %v3749_v60 }
 0x14c   : > { %v3155_v49 = vpop.f32.mrf.mxu0  ;;  %v3829_v52 = vpop.f32.mrf.mxu1 }
 0x14d   : > { %4081 = vst [vmem:[#allocation8_spill] sm:$0xff] %v3826_v57  ;;  %v3831_v2 = vadd.f32 %v3155_v49, %v1885_v17 }
 0x14e   : > { %v2119_v4 = vpop.f32.mrf.mxu0  ;;  %v3833_v55 = vpop.f32.mrf.mxu1 }
 0x14f   : > { %4082 = vst [vmem:[#allocation9_spill] sm:$0xff] %v3831_v2  ;;  %v3835_v39 = vadd.f32 %v2119_v4, %v1883_v21 }
 0x150   : > { %v3158_v56 = vpop.f32.mrf.mxu0  ;;  %v3837_v7 = vpop.f32.mrf.mxu1 }
 0x151   : > { %4083 = vst [vmem:[#allocation10_spill] sm:$0xff] %v3835_v39  ;;  %v3839_v58 = vadd.f32 %v3158_v56, %v1888_v28 }
 0x152   : > { %v2132_v41 = vpop.f32.mrf.mxu0  ;;  %v3841_v60 = vpop.f32.mrf.mxu1 }
 0x153   : > { %4084 = vst [vmem:[#allocation11_spill] sm:$0xff] %v3839_v58  ;;  %v3843_v11 = vadd.f32 %v2132_v41, %v1886_v36  ;;  %v1896_v58 = vadd.f32 %v3837_v7, %v3755_v9 }
 0x154   : > { %v3159_v61 = vpop.f32.mrf.mxu0  ;;  %v3133_v15 = vpop.f32.mrf.mxu1 }
 0x155   : > { %4085 = vst [vmem:[#allocation12_spill] sm:$0xff] %v3843_v11  ;;  %v3845_v17 = vadd.f32 %v3159_v61, %v1889_v27 }
 0x156   : > { %v2135_v18 = vpop.f32.mrf.mxu0  ;;  %v3847_v3 = vpop.f32.mrf.mxu1 }
 0x157   : > { %v3849_v22 = vadd.f32 %v2135_v18, %v1887_v29  ;;  %v1895_v9 = vadd.f32 %v3847_v3, %v3764_v19 }
 0x158   : > { %v3162_v21 = vpop.f32.mrf.mxu0  ;;  %v3136_v23 = vpop.f32.mrf.mxu1 }
 0x159   : > { %4086 = vst [vmem:[#allocation13_spill] sm:$0xff] %v3849_v22  ;;  %v3851_v30 = vadd.f32 %v3162_v21, %v1892_v47  ;;  %v1900_v28 = vadd.f32 %v3136_v23, %v3767_v24 }
 0x15a   : > { %v2148_v25 = vpop.f32.mrf.mxu0  ;;  %v1819_v16 = vpop.f32.mrf.mxu1 }
 0x15b   : > { %v3854_v42 = vadd.f32 %v2148_v25, %v1890_v33  ;;  %v1898_v36 = vadd.f32 %v1819_v16, %v3770_v32 }
 0x15c   : > { %v3857_v20 = vpop.f32.mrf.mxu0  ;;  %v3137_v27 = vpop.f32.mrf.mxu1 }
 0x15d   : > { %v1901_v44 = vadd.f32 %v3137_v27, %v3773_v40 }
 0x15e   : > { %v3860_v53 = vpop.f32.mrf.mxu0  ;;  %v1822_v29 = vpop.f32.mrf.mxu1 }
 0x15f   : > { %v1899_v31 = vadd.f32 %v1822_v29, %v3776_v50 }
 0x160   : > { %v3166_v47 = vpop.f32.mrf.mxu0  ;;  %v3863_v46 = vpop.f32.mrf.mxu1 }
 0x162   : > { %v3865_v24 = vpop.f32.mrf.mxu0  ;;  %v3867_v51 = vpop.f32.mrf.mxu1 }
 0x163   : > { %4087 = vst [vmem:[#allocation14_spill] sm:$0xff] %v3867_v51 }
 0x164   : > { %v3167_v33 = vpop.f32.mrf.mxu0  ;;  %v3869_v49 = vpop.f32.mrf.mxu1 }
 0x166   : > { %v2167_v32 = vpop.f32.mrf.mxu0  ;;  %v3871_v62 = vpop.f32.mrf.mxu1 }
 0x168   : > { %v3170_v4 = vpop.f32.mrf.mxu0  ;;  %v3873_v40 = vpop.f32.mrf.mxu1 }
 0x169   : > { %v3875_v56 = vadd.f32 %v3170_v4, %v1900_v28 }
 0x16a   : > { %v2180_v41 = vpop.f32.mrf.mxu0  ;;  %v3877_v50 = vpop.f32.mrf.mxu1 }
 0x16b   : > { %4088 = vst [vmem:[#allocation15_spill] sm:$0xff] %v3875_v56  ;;  %v3879_v61 = vadd.f32 %v2180_v41, %v1898_v36 }
 0x16c   : > { %v3171_v18 = vpop.f32.mrf.mxu0  ;;  %v3145_v23 = vpop.f32.mrf.mxu1 }
 0x16d   : > { %4089 = vst [vmem:[#allocation16_spill] sm:$0xff] %v3879_v61  ;;  %v3881_v21 = vadd.f32 %v3171_v18, %v1901_v44  ;;  %v1909_v19 = vadd.f32 %v3145_v23, %v3798_v14 }
 0x16e   : > { %v2183_v25 = vpop.f32.mrf.mxu0  ;;  %v3887_v29 = vpop.f32.mrf.mxu1 }
 0x16f   : > { %4090 = vst [vmem:[#allocation17_spill] sm:$0xff] %v3881_v21  ;;  %v3883_v16 = vadd.f32 %v2183_v25, %v1899_v31  ;;  %v1189_v31 = vadd.f32 %v3785_v35, %v3727_v43  ;;  %v1897_v25 = vadd.f32 %v3133_v15, %v3761_v0  ;;  %v3907_v43 = vld [vmem:[%s4066_s10] ss:$0 sm:$0xff] }
 0x170   : > { %v3885_v27 = vpop.f32.mrf.mxu0  ;;  %v3148_v4 = vpop.f32.mrf.mxu1 }
 0x171   : > { %4091 = vst [vmem:[#allocation18_spill] sm:$0xff] %v3883_v16  ;;  %v1552_v34 = vadd.f32 %v3810_v38, %v1189_v31  ;;  %v1912_v56 = vadd.f32 %v3148_v4, %v3804_v8  ;;  %v2258_v2 = vadd.f32 %v3167_v33, %v1897_v25  ;;  %v2257_v38 = vadd.f32 %v3166_v47, %v1896_v58 }
 0x172   : > { %v3889_v26 = vpop.f32.mrf.mxu0  ;;  %v1867_v41 = vpop.f32.mrf.mxu1  ;;  %v1906_v25 = vadd.f32 %v3877_v50, %v3795_v10 }
 0x173   : > { %4092 = vst [vmem:[#allocation19_spill] sm:$0xff] %v3889_v26  ;;  %v2297_v8 = vadd.f32 %v3907_v43, %v2258_v2  ;;  %v1910_v7 = vadd.f32 %v1867_v41, %v3807_v12  ;;  %v2296_v4 = vadd.f32 %v3907_v43, %v2257_v38 }
 0x174   : > { %v3891_v28 = vpop.f32.mrf.mxu0  ;;  %v3149_v18 = vpop.f32.mrf.mxu1 }
 0x175   : > { %v1913_v22 = vadd.f32 %v3149_v18, %v1552_v34  ;;  %v2329_v18 = vmax.f32 %v2297_v8, 0.0  ;;  %v2328_v12 = vmax.f32 %v2296_v4, 0.0 }
 0x176   : > { %v3893_v57 = vpop.f32.mrf.mxu0  ;;  %v1870_v21 = vpop.f32.mrf.mxu1 }
 0x177   : > { %v1911_v0 = vadd.f32 %v1870_v21, %v3813_v48  ;;  %v2256_v48 = vadd.f32 %v2167_v32, %v1895_v9  ;;  %v1893_v21 = vadd.f32 %v3829_v52, %v3751_v1  ;;  %v1907_v1 = vadd.f32 %v3887_v29, %v3801_v45 }
 0x178   : > { %v3178_v36 = vpop.f32.mrf.mxu0  ;;  %v2292_v45 = vadd.f32 %v3907_v43, %v3851_v30 }
 0x179   : > { %v2295_v47 = vadd.f32 %v3907_v43, %v2256_v48  ;;  %v2254_v14 = vadd.f32 %v3857_v20, %v1893_v21  ;;  %v4096_v48 = vld [vmem:[#allocation13_spill] sm:$0xff]  ;;  %v4100_v21 = vld [vmem:[#allocation15_spill] sm:$0xff] }
 0x17a   : > { %v3895_v61 = vpop.f32.mrf.mxu0  ;;  %v2324_v10 = vmax.f32 %v2292_v45, 0.0  ;;  %v4095_v4 = vld [vmem:[#allocation19_spill] sm:$0xff] }
 0x17b   : > { %v2267_v38 = vadd.f32 %v3895_v61, %v1906_v25  ;;  %v1904_v61 = vadd.f32 %v3863_v46, %v3779_v54  ;;  %v2289_v54 = vadd.f32 %v3907_v43, %v3845_v17  ;;  %v4105_v25 = vld [vmem:[#allocation8_spill] sm:$0xff] }
 0x17c   : > { %v3179_v44 = vpop.f32.mrf.mxu0  ;;  %v2282_v45 = vadd.f32 %v3907_v43, %v4105_v25 }
 0x17d   : > { %v2306_v50 = vadd.f32 %v3907_v43, %v2267_v38  ;;  %v2265_v8 = vadd.f32 %v3885_v27, %v1904_v61  ;;  %v4093_v27 = vld [vmem:[#allocation14_spill] sm:$0xff] }
 0x17e   : > { %v2215_v39 = vpop.f32.mrf.mxu0  ;;  %v1902_v9 = vadd.f32 %v4093_v27, %v3782_v59  ;;  %v4106_v38 = vld [vmem:[#allocation6_spill] sm:$0xff] }
 0x17f   : > { %v2268_v31 = vadd.f32 %v2215_v39, %v1907_v1 }
 0x180   : > { %v3182_v16 = vpop.f32.mrf.mxu0  ;;  %v2263_v17 = vadd.f32 %v4095_v4, %v1902_v9 }
 0x181   : > { %v2273_v26 = vadd.f32 %v3182_v16, %v1912_v56  ;;  %v2307_v39 = vadd.f32 %v3907_v43, %v2268_v31 }
 0x182   : > { %v2228_v11 = vpop.f32.mrf.mxu0  ;;  %v2302_v59 = vadd.f32 %v3907_v43, %v2263_v17 }
 0x183   : > { %v2312_v33 = vadd.f32 %v3907_v43, %v2273_v26  ;;  %v2271_v58 = vadd.f32 %v2228_v11, %v1910_v7  ;;  %v1894_v26 = vadd.f32 %v3841_v60, %v3758_v13  ;;  %v1908_v13 = vadd.f32 %v3873_v40, %v3792_v6  ;;  %v4094_v7 = vld [vmem:[#allocation11_spill] sm:$0xff] }
 0x184   : > { %v3183_v51 = vpop.f32.mrf.mxu0  ;;  %v2293_v6 = vadd.f32 %v3907_v43, %v2254_v14 }
 0x185   : > { %v2274_v35 = vadd.f32 %v3183_v51, %v1913_v22  ;;  %v2344_v22 = vmax.f32 %v2312_v33, 0.0  ;;  %v2255_v3 = vadd.f32 %v3865_v24, %v1894_v26  ;;  %v2270_v51 = vadd.f32 %v3179_v44, %v1909_v19 }
 0x186   : > { %v2231_v15 = vpop.f32.mrf.mxu0  ;;  %v2310_v11 = vadd.f32 %v3907_v43, %v2271_v58  ;;  %v2327_v24 = vmax.f32 %v2295_v47, 0.0  ;;  %v2269_v23 = vadd.f32 %v3178_v36, %v1908_v13  ;;  %v1891_v36 = vadd.f32 %v3833_v55, %v3753_v5 }
 0x187   : > { %v2313_v34 = vadd.f32 %v3907_v43, %v2274_v35  ;;  %v2272_v56 = vadd.f32 %v2231_v15, %v1911_v0  ;;  %v2294_v60 = vadd.f32 %v3907_v43, %v2255_v3  ;;  %v2309_v41 = vadd.f32 %v3907_v43, %v2270_v51  ;;  %v4099_v51 = vld [vmem:[#allocation9_spill] sm:$0xff] }
 0x188   : > { %v2342_v44 = vmax.f32 %v2310_v11, 0.0  ;;  %v2308_v40 = vadd.f32 %v3907_v43, %v2269_v23  ;;  %v2325_v29 = vmax.f32 %v2293_v6, 0.0  ;;  %v2252_v0 = vadd.f32 %v3860_v53, %v1891_v36 }
 0x189   : > { %v2345_v16 = vmax.f32 %v2313_v34, 0.0  ;;  %v2311_v2 = vadd.f32 %v3907_v43, %v2272_v56  ;;  %v2326_v52 = vmax.f32 %v2294_v60, 0.0  ;;  %v2341_v20 = vmax.f32 %v2309_v41, 0.0  ;;  %v4101_v60 = vld [vmem:[#allocation7_spill] sm:$0xff] }
 0x18a   : > { %v2340_v35 = vmax.f32 %v2308_v40, 0.0  ;;  %v1905_v5 = vadd.f32 %v3869_v49, %v3787_v63  ;;  %v2291_v55 = vadd.f32 %v3907_v43, %v2252_v0  ;;  %v2339_v53 = vmax.f32 %v2307_v39, 0.0 }
 0x18b   : > { %2980 = vmatprep.subr.msk.mxu1 %vm2347_vm1, %v2345_v16  ;;  %v2343_v32 = vmax.f32 %v2311_v2, 0.0  ;;  %v2290_v63 = vadd.f32 %v3907_v43, %v3854_v42  ;;  %v2338_v33 = vmax.f32 %v2306_v50, 0.0  ;;  %v2304_v34 = vadd.f32 %v3907_v43, %v2265_v8  ;;  %v4097_v2 = vld [vmem:[#allocation12_spill] sm:$0xff] }
 0x18c   : > { %2981 = vmatpush3.xpose.msk.msra.mxu1 %vm2347_vm1, %v2329_v18  ;;  %v2266_v30 = vadd.f32 %v3891_v28, %v1905_v5  ;;  %v2323_v49 = vmax.f32 %v2291_v55, 0.0  ;;  %v1903_v28 = vadd.f32 %v3871_v62, %v3789_v37  ;;  %v2288_v37 = vadd.f32 %v3907_v43, %v4094_v7 }
 0x18d   : > { %2982 = vmatprep.subr.msk.mxu1 %vm2347_vm1, %v2344_v22  ;;  %v2322_v46 = vmax.f32 %v2290_v63, 0.0  ;;  %v2321_v62 = vmax.f32 %v2289_v54, 0.0  ;;  %v2336_v16 = vmax.f32 %v2304_v34, 0.0  ;;  %v2287_v22 = vadd.f32 %v3907_v43, %v4096_v48 }
 0x18e   : > { %v2305_v15 = vadd.f32 %v3907_v43, %v2266_v30  ;;  %v2264_v56 = vadd.f32 %v3893_v57, %v1903_v28  ;;  %v2320_v57 = vmax.f32 %v2288_v37, 0.0  ;;  %v2286_v26 = vadd.f32 %v3907_v43, %v4097_v2 }
 0x18f   : > { %v2319_v19 = vmax.f32 %v2287_v22, 0.0  ;;  %v2334_v47 = vmax.f32 %v2302_v59, 0.0  ;;  %v2285_v11 = vadd.f32 %v3907_v43, %v4099_v51  ;;  %v2300_v13 = vadd.f32 %v3907_v43, %v4100_v21 }
 0x190   : > { %2983 = vmatpush3.xpose.msk.msra.mxu1 %vm2347_vm1, %v2328_v12  ;;  %v2337_v42 = vmax.f32 %v2305_v15, 0.0  ;;  %v2303_v18 = vadd.f32 %v3907_v43, %v2264_v56  ;;  %v4098_v12 = vld [vmem:[#allocation17_spill] sm:$0xff]  ;;  %v2524_v39 = vlaneseq  ;;  %v3376_v55 = vmov 1966171168  }
 0x191   : > { %2984 = vmatprep.subr.msk.mxu1 %vm2347_vm1, %v2343_v32  ;;  %v2301_v3 = vadd.f32 %v3907_v43, %v4098_v12  ;;  %v2318_v32 = vmax.f32 %v2286_v26, 0.0  ;;  %v2317_v23 = vmax.f32 %v2285_v11, 0.0  ;;  %v2332_v41 = vmax.f32 %v2300_v13, 0.0 }
 0x192   : > { %v2335_v58 = vmax.f32 %v2303_v18, 0.0  ;;  %v2525_v5 = vshrl.u32 %v2524_v39, 7  ;;  %v2534_v30 = vunpack.c.l.s4 %v3376_v55  ;;  %vm2550_vm2 = vcmp.lt.s32.totalorder %v2524_v39, 256 }
 0x193   : > { %v2333_v14 = vmax.f32 %v2301_v3, 0.0 }
 0x194   : > { %2985 = vmatpush3.xpose.msk.msra.mxu1 %vm2347_vm1, %v2327_v24  ;;  %v2284_v24 = vadd.f32 %v3907_v43, %v4101_v60 }
 0x195   : > { %2986 = vmatprep.subr.msk.mxu1 %vm2347_vm1, %v2342_v44  ;;  %v4102_v44 = vld [vmem:[#allocation18_spill] sm:$0xff] }
 0x196   : > { %v2299_v1 = vadd.f32 %v3907_v43, %v4102_v44  ;;  %v2316_v6 = vmax.f32 %v2284_v24, 0.0 }
 0x198   : > { %2987 = vmatpush3.xpose.msk.msra.mxu1 %vm2347_vm1, %v2326_v52  ;;  %v4103_v52 = vld [vmem:[#allocation10_spill] sm:$0xff]  ;;  %v2331_v36 = vmax.f32 %v2299_v1, 0.0 }
 0x199   : > { %2988 = vmatprep.subr.msk.mxu1 %vm2347_vm1, %v2341_v20  ;;  %v2283_v40 = vadd.f32 %v3907_v43, %v4103_v52  ;;  %v4104_v20 = vld [vmem:[#allocation16_spill] sm:$0xff] }
 0x19a   : > { %v2298_v31 = vadd.f32 %v3907_v43, %v4104_v20 }
 0x19c   : > { %2989 = vmatpush3.xpose.msk.msra.mxu1 %vm2347_vm1, %v2325_v29  ;;  %v2315_v29 = vmax.f32 %v2283_v40, 0.0  ;;  %v2330_v0 = vmax.f32 %v2298_v31, 0.0 }
 0x19d   : > { %2990 = vmatprep.subr.msk.mxu1 %vm2347_vm1, %v2340_v35  ;;  %v2314_v35 = vmax.f32 %v2282_v45, 0.0 }
 0x1a0   : > { %2991 = vmatpush3.xpose.msk.msra.mxu1 %vm2347_vm1, %v2324_v10  ;;  %v2526_v10 = vsub.s32 0, %v2525_v5 }
 0x1a1   : > { %2992 = vmatprep.subr.msk.mxu1 %vm2347_vm1, %v2339_v53  ;;  %v2535_v53 = vunpack.c.0.s8 %v2534_v30 }
 0x1a3   : > { %v2538_v15 = vsub.s32 %v2535_v53, %v2525_v5 }
 0x1a4   : > { %2993 = vmatpush3.xpose.msk.msra.mxu1 %vm2347_vm1, %v2323_v49 }
 0x1a5   : > { %2994 = vmatprep.subr.msk.mxu1 %vm2347_vm1, %v2338_v33 }
 0x1a8   : > { %2995 = vmatpush3.xpose.msk.msra.mxu1 %vm2347_vm1, %v2322_v46 }
 0x1a9   : > { %2996 = vmatprep.subr.msk.mxu1 %vm2347_vm1, %v2337_v42 }
 0x1ac   : > { %2997 = vmatpush3.xpose.msk.msra.mxu1 %vm2347_vm1, %v2321_v62 }
 0x1ad   : > { %2998 = vmatprep.subr.msk.mxu1 %vm2347_vm1, %v2336_v16 }
 0x1b0   : > { %2999 = vmatpush3.xpose.msk.msra.mxu1 %vm2347_vm1, %v2320_v57 }
 0x1b1   : > { %3000 = vmatprep.subr.msk.mxu1 %vm2347_vm1, %v2335_v58 }
 0x1b4   : > { %3001 = vmatpush3.xpose.msk.msra.mxu1 %vm2347_vm1, %v2319_v19 }
 0x1b5   : > { %3002 = vmatprep.subr.msk.mxu1 %vm2347_vm1, %v2334_v47 }
 0x1b8   : > { %3003 = vmatpush3.xpose.msk.msra.mxu1 %vm2347_vm1, %v2318_v32 }
 0x1b9   : > { %3004 = vmatprep.subr.msk.mxu1 %vm2347_vm1, %v2333_v14 }
 0x1bc   : > { %3005 = vmatpush3.xpose.msk.msra.mxu1 %vm2347_vm1, %v2317_v23 }
 0x1bd   : > { %3006 = vmatprep.subr.msk.mxu1 %vm2347_vm1, %v2332_v41 }
 0x1c0   : > { %3007 = vmatpush3.xpose.msk.msra.mxu1 %vm2347_vm1, %v2316_v6 }
 0x1c1   : > { %3008 = vmatprep.subr.msk.mxu1 %vm2347_vm1, %v2331_v36 }
 0x1c3   : > { %v2522_v50 = vpop.permute.xlu0 %2521 }
 0x1c4   : > { %3009 = vmatpush3.xpose.msk.msra.mxu1 %vm2347_vm1, %v2315_v29  ;;  %v2527_v43 = vrot.slane %v2522_v50, %v2526_v10 }
 0x1c5   : > { %3010 = vmatprep.subr.msk.mxu1 %vm2347_vm1, %v2330_v0 }
 0x1c8   : > { %3011 = vmatpush3.xpose.msk.msra.mxu1 %vm2347_vm1, %v2314_v35 }
 0x1cb   : > { %3013 = vmatmul.mubr.msk.f32.vlgmr.msra.gmra.mxu1 %vm2347_vm1, %v4106_v38 }
 0x28b   : > { %v2513_v61 = vpop.f32.mrf.mxu1 }
 0x28c   : > { %v2528_v49 = vadd.f32 %v2527_v43, %v2513_v61 }
 0x28d   : > { %v2515_v63 = vpop.f32.mrf.mxu1 }
 0x28e   : > { %v2529_v8 = vadd.f32 %v2527_v43, %v2515_v63 }
 0x290   : > { %v2532_v33 = vcombine.low %v2528_v49, %v2529_v8 }
 0x292   : > { %v2539_v28 = vrot.slane %v2532_v33, %v2538_v15 }
 0x294   : > { %v2546_v54 = vrot.slane %v2539_v28, %v2538_v15 }
 0x296   : > { %2552 = vst.msk [vmem:[%s500_s12] sm:$0x3] %vm2550_vm2, %v2546_v54 }
 0x297   : > { %3326 = shalt.err (!%p3323_p3)
}
 0x298   : > { %s3327_s2 = scalar_lea.hbm %s2566_s21, 32  ;;  %s3331_s12 = scalar_lea.hbm %s4069_s13, 64 }
 0x299   : > { %p3328_p4 = scmp.ne.s32.totalorder %s2566_s21, %s3327_s2  ;;  %p3332_p9 = scmp.lt.s32.totalorder %s2566_s21, %s4069_s13 }
 0x29a   : > { %p3333_p10 = scmp.lt.s32.totalorder %s3331_s12, %s3327_s2 }
 0x29b   : > { %p3329_p7 = pnand %p3328_p4, %p3486_p5 }
 0x29c   : > { %p3334_p11 = por %p3333_p10, %p3332_p9 }
 0x29d   : > { %p3330_p8 = pneg %p3329_p7 }
 0x29f   : > { %p3335_p12 = pnand %p3334_p11, %p3330_p8 }
 0x2a1   : > { %3338 = shalt.err (!%p3335_p12)
}
 0x2a2   : > { %3186 = dma.vmem_to_hbm [thread:$0]  (%p3486_p5), %s2569_s24, 32, %s2566_s21, %s2554_s26  }
 0x2a3 PF: > { %p3192_p13 = scmp.ge.s32.totalorder %s3373_s30, 2  ;;  %s2580_s0 = sand.u32 1, %s3361_s27  }
 0x2a4   : > { %s2581_s1 = scalar_lea.sflag [#allocation4], %s2580_s0 }
 0x2a5   : > { %p3189_p0 = pnand %p3192_p13, %p3490_p6 }
 0x2a7   : > { %p3190_p1 = pneg %p3189_p0 }
 0x2a9   : > { %3356 = dma.done.wait (%p3190_p1), %s2581_s1, 32  }
 0x2aa   : > { %3358 = vsyncadd (%p3190_p1), %s2581_s1, 4294967264  ;;  %p25_p2 = scmp.ge.s32.totalorder %s3474_s15, 4   ;;  %s4107_s27 = smov %s3365_s28 }
 0x2ab   : > { %s4108_s28 = smov %s3369_s29  ;;  %s4109_s29 = smov %s3484_s18 }
 0x2ac   : > { %s4110_s30 = smov %s3474_s15  ;;  %27 = sbr.rel (!%p25_p2) target bundleno = 7 (0x7), region = 119 }
 0x2b1   :  { %2586 = vsyncpa [#allocation4], 1 }
 0x2b2   :  { %2588 = vsyncpa [#allocation4 + $0x1], 1 }

</bundles_post_ra>
